<compile_context>
chip_gen: v6e
topology: v6e:2x2x1
jax: 0.10.0
libtpu: 0.0.40
codegen_flags: <defaults>
</compile_context>

<pallas_src>
import functools

import jax
import jax.numpy as jnp
from jax.experimental import pallas as pl
from jax.experimental.pallas import tpu as pltpu


def _focal_kernel(x_ref, t_ref, a_ref, out_ref, *, gamma, hw, tile_hw, need_mask):
    # x_ref: (C, T) logits tile (class axis on sublanes, spatial on lanes)
    # t_ref: (1, T) int32 targets
    # a_ref: (C, 1) f32 per-class alpha weights
    # out_ref: (8, 128) f32 per-tile partial-sum block
    x = x_ref[...].astype(jnp.float32)                       # (C, T)
    t = t_ref[...]                                           # (1, T)
    a = a_ref[...].astype(jnp.float32)                       # (C, 1)

    # numerically-stable log-softmax pieces over the class (sublane) axis
    m = jnp.max(x, axis=0, keepdims=True)                    # (1, T)
    z = x - m
    lse = jnp.log(jnp.sum(jnp.exp(z), axis=0, keepdims=True))  # (1, T)

    # fused one-hot gathers (no full logp matrix):
    #   logpt = sum(z * onehot) - lse ;  at = sum(alpha * onehot)
    cls = jax.lax.broadcasted_iota(jnp.int32, x.shape, 0)    # (C, T)
    onehot = (cls == t).astype(jnp.float32)                  # (C, T)
    logpt = jnp.sum(z * onehot, axis=0, keepdims=True) - lse  # (1, T)
    at = jnp.sum(a * onehot, axis=0, keepdims=True)           # (1, T)

    pt = jnp.exp(logpt)
    one_minus_pt = 1.0 - pt
    g = float(gamma)
    if g == 0.0:
        focal = jnp.ones_like(pt)
    elif g.is_integer() and g > 0:
        focal = one_minus_pt
        for _ in range(int(g) - 1):
            focal = focal * one_minus_pt
    else:
        focal = jnp.power(one_minus_pt, g)

    loss = -focal * logpt * at                               # (1, T)

    if need_mask:
        # mask out padded columns of the last (partial) spatial tile
        col = (pl.program_id(1) * tile_hw
               + jax.lax.broadcasted_iota(jnp.int32, loss.shape, 1))
        loss = jnp.where(col < hw, loss, 0.0)

    partial = jnp.sum(loss)                                  # scalar
    # splat into this tile's private (8, 128) output block; wrapper reads [0, 0]
    out_ref[...] = jnp.full((8, 128), partial, dtype=jnp.float32)


def focal_loss_pallas(logits, target, *, gamma=2.0, alpha=None,
                      size_average=True, max_block_bytes=4 * 1024 * 1024):
    """Focal loss matching the PyTorch FocalLoss.forward semantics.

    logits: (N, C, *spatial) float (f32 or bf16); target: (N, *spatial) int.
    2-D logits (M, C) are also accepted.
    """
    if logits.ndim == 2:
        # corner case: (M, C) -> (1, C, M) so the class axis sits on sublanes
        x3 = jnp.transpose(logits, (1, 0))[None, :, :]
        t3 = target.reshape(1, 1, -1).astype(jnp.int32)
    else:
        N0, C0 = logits.shape[0], logits.shape[1]
        hw = 1
        for d in logits.shape[2:]:
            hw *= d
        x3 = logits.reshape(N0, C0, hw)                      # free reshape, no transpose
        t3 = target.reshape(N0, 1, hw).astype(jnp.int32)

    N, C, HW = x3.shape
    M = N * HW

    # Pick the largest lane-dense spatial tile that keeps the logits block
    # <= max_block_bytes (double-buffered inputs stay far below the 32 MiB
    # scoped-VMEM limit we set below — safe on v5e/v6e/v7x alike).
    itemsize = jnp.dtype(x3.dtype).itemsize
    cand = max(128, ((max_block_bytes // (C * itemsize)) // 128) * 128)
    if HW <= cand:
        tile_hw = HW                 # full extent (single spatial tile)
        grid_hw = 1
    else:
        tile_hw = cand
        grid_hw = pl.cdiv(HW, tile_hw)
    need_mask = (HW % tile_hw) != 0

    if alpha is None:
        alpha_col = jnp.ones((C, 1), dtype=jnp.float32)
    else:
        alpha_col = jnp.asarray(alpha, dtype=jnp.float32).reshape(C, 1)

    num_tiles = N * grid_hw
    kernel = functools.partial(_focal_kernel, gamma=gamma, hw=HW,
                               tile_hw=tile_hw, need_mask=need_mask)

    out = pl.pallas_call(
        kernel,
        out_shape=jax.ShapeDtypeStruct((num_tiles * 8, 128), jnp.float32),
        grid_spec=pltpu.PrefetchScalarGridSpec(
            num_scalar_prefetch=0,
            grid=(N, grid_hw),
            in_specs=[
                # logits: (N, C, HW) -> (C, tile_hw) block, batch dim squeezed
                pl.BlockSpec((None, C, tile_hw), lambda i, j: (i, 0, j)),
                # targets: (N, 1, HW) -> (1, tile_hw) block
                pl.BlockSpec((None, 1, tile_hw), lambda i, j: (i, 0, j)),
                # alpha: tiny (C, 1) block, resident (constant index map)
                pl.BlockSpec((C, 1), lambda i, j: (0, 0)),
            ],
            # each grid step owns its private (8, 128) output block
            out_specs=pl.BlockSpec((8, 128), lambda i, j: (i * grid_hw + j, 0)),
        ),
        compiler_params=pltpu.CompilerParams(
            dimension_semantics=("parallel", "parallel"),
            vmem_limit_bytes=32 * 1024 * 1024,
        ),
    )(x3, t3, alpha_col)

    # tiny final reduction in the wrapper (tree reduce, no serial drift)
    partials = out.reshape(num_tiles, 8, 128)[:, 0, 0]
    total = jnp.sum(partials)
    if size_average:
        total = total / jnp.float32(M)
    return total


def focal_loss_ref(logits_nchw, target_nhw, *, gamma=2.0, alpha=None,
                   size_average=True):
    N, C, H, W = logits_nchw.shape
    x = jnp.transpose(logits_nchw.reshape(N, C, H * W), (0, 2, 1)).reshape(-1, C)
    t = target_nhw.reshape(-1)
    logp = jax.nn.log_softmax(x.astype(jnp.float32), axis=1)
    logpt = jnp.take_along_axis(logp, t[:, None], axis=1)[:, 0]
    pt = jnp.exp(logpt)
    if alpha is not None:
        at = jnp.asarray(alpha, jnp.float32)[t]
        logpt = logpt * at
    loss = -((1.0 - pt) ** gamma) * logpt
    return loss.mean() if size_average else loss.sum()


if __name__ == "__main__":
    key = jax.random.PRNGKey(0)
    k1, k2 = jax.random.split(key)

    N, C, H, W = 2, 4, 16, 16         # M = 512 rows, 4 classes
    gamma = 2.0
    alpha = [0.25, 0.25, 0.25, 0.25]  # deterministic per-class weights

    logits = jax.random.normal(k1, (N, C, H, W), dtype=jnp.float32)
    target = jax.random.randint(k2, (N, H, W), 0, C, dtype=jnp.int32)

    out = focal_loss_pallas(logits, target, gamma=gamma, alpha=alpha,
                            size_average=True)
    out = jax.block_until_ready(out)

    ref = focal_loss_ref(logits, target, gamma=gamma, alpha=alpha,
                         size_average=True)
    assert jnp.allclose(out, ref, rtol=1e-5, atol=1e-5), (out, ref)

    print("KERNEL_OK")
</pallas_src>

<mosaic_0001>
module attributes {stable_mosaic.version = 11 : i64} {
  func.func @_focal_kernel(%arg0: i32, %arg1: i32, %arg2: memref<1x4x256xf32, #tpu.memory_space<vmem>>, %arg3: memref<1x1x256xi32, #tpu.memory_space<vmem>>, %arg4: memref<4x1xf32, #tpu.memory_space<vmem>>, %arg5: memref<8x128xf32, #tpu.memory_space<vmem>>) attributes {dimension_semantics = [#tpu.dimension_semantics<parallel>, #tpu.dimension_semantics<parallel>], iteration_bounds = array<i64: 2, 1>, scalar_prefetch = 0 : i64, scratch_operands = 0 : i64, tpu.core_type = #tpu.core_type<tc>, window_params = [{transform_indices = @transform_0, window_bounds = array<i64: 1, 4, 256>}, {transform_indices = @transform_1, window_bounds = array<i64: 1, 1, 256>}, {pipeline_mode = #tpu.pipeline_mode<synchronous>, transform_indices = @transform_2, window_bounds = array<i64: 4, 1>}, {transform_indices = @transform_3, window_bounds = array<i64: 8, 128>}]} {
    %c0 = arith.constant 0 : index
    %c0_0 = arith.constant 0 : index
    %c0_1 = arith.constant 0 : index
    %0 = vector.load %arg2[%c0, %c0_0, %c0_1] : memref<1x4x256xf32, #tpu.memory_space<vmem>>, vector<1x4x256xf32>
    %1 = vector.shape_cast %0 : vector<1x4x256xf32> to vector<4x256xf32>
    %c0_2 = arith.constant 0 : index
    %c0_3 = arith.constant 0 : index
    %c0_4 = arith.constant 0 : index
    %2 = vector.load %arg3[%c0_2, %c0_3, %c0_4] : memref<1x1x256xi32, #tpu.memory_space<vmem>>, vector<1x1x256xi32>
    %3 = vector.shape_cast %2 : vector<1x1x256xi32> to vector<1x256xi32>
    %c0_5 = arith.constant 0 : index
    %c0_6 = arith.constant 0 : index
    %4 = vector.load %arg4[%c0_5, %c0_6] : memref<4x1xf32, #tpu.memory_space<vmem>>, vector<4x1xf32>
    %cst = arith.constant dense<0xFF800000> : vector<256xf32>
    %5 = vector.multi_reduction <maximumf>, %1, %cst [0] : vector<4x256xf32> to vector<256xf32>
    %6 = vector.shape_cast %5 : vector<256xf32> to vector<1x256xf32>
    %7 = vector.broadcast %6 : vector<1x256xf32> to vector<4x256xf32>
    %8 = arith.subf %1, %7 : vector<4x256xf32>
    %9 = math.exp %8 : vector<4x256xf32>
    %cst_7 = arith.constant dense<0.000000e+00> : vector<256xf32>
    %10 = vector.multi_reduction <add>, %9, %cst_7 [0] : vector<4x256xf32> to vector<256xf32>
    %11 = vector.shape_cast %10 : vector<256xf32> to vector<1x256xf32>
    %12 = math.log %11 : vector<1x256xf32>
    %13 = tpu.iota {dimensions = array<i32: 0>} : vector<4x256xi32>
    %14 = vector.broadcast %3 : vector<1x256xi32> to vector<4x256xi32>
    %15 = arith.cmpi eq, %13, %14 : vector<4x256xi32>
    %16 = arith.extui %15 : vector<4x256xi1> to vector<4x256xi32>
    %17 = arith.sitofp %16 : vector<4x256xi32> to vector<4x256xf32>
    %18 = arith.mulf %8, %17 : vector<4x256xf32>
    %cst_8 = arith.constant dense<0.000000e+00> : vector<256xf32>
    %19 = vector.multi_reduction <add>, %18, %cst_8 [0] : vector<4x256xf32> to vector<256xf32>
    %20 = vector.shape_cast %19 : vector<256xf32> to vector<1x256xf32>
    %21 = arith.subf %20, %12 : vector<1x256xf32>
    %22 = vector.broadcast %4 : vector<4x1xf32> to vector<4x256xf32>
    %23 = arith.mulf %22, %17 : vector<4x256xf32>
    %cst_9 = arith.constant dense<0.000000e+00> : vector<256xf32>
    %24 = vector.multi_reduction <add>, %23, %cst_9 [0] : vector<4x256xf32> to vector<256xf32>
    %25 = vector.shape_cast %24 : vector<256xf32> to vector<1x256xf32>
    %26 = math.exp %21 : vector<1x256xf32>
    %cst_10 = arith.constant 1.000000e+00 : f32
    %27 = vector.broadcast %cst_10 : f32 to vector<1x256xf32>
    %28 = arith.subf %27, %26 : vector<1x256xf32>
    %29 = arith.mulf %28, %28 : vector<1x256xf32>
    %cst_11 = arith.constant 0.000000e+00 : f32
    %30 = vector.broadcast %cst_11 : f32 to vector<1x256xf32>
    %31 = arith.subf %30, %29 : vector<1x256xf32>
    %32 = arith.mulf %31, %21 : vector<1x256xf32>
    %33 = arith.mulf %32, %25 : vector<1x256xf32>
    %34 = vector.shape_cast %33 : vector<1x256xf32> to vector<1x1x256xf32>
    %cst_12 = arith.constant dense<0.000000e+00> : vector<1xf32>
    %35 = vector.multi_reduction <add>, %34, %cst_12 [1, 2] : vector<1x1x256xf32> to vector<1xf32>
    %36 = vector.shape_cast %35 : vector<1xf32> to vector<1x1x1xf32>
    %37 = vector.extract %36[0, 0, 0] : f32 from vector<1x1x1xf32>
    %38 = vector.broadcast %37 : f32 to vector<8x128xf32>
    %c0_13 = arith.constant 0 : index
    %c0_14 = arith.constant 0 : index
    %39 = vector.load %arg5[%c0_13, %c0_14] : memref<8x128xf32, #tpu.memory_space<vmem>>, vector<8x128xf32>
    tpu.vector_store %arg5[%c0_13, %c0_14], %38 {strides = array<i32>} : memref<8x128xf32, #tpu.memory_space<vmem>>, vector<8x128xf32>,
    return
  }
  func.func @transform_0(%arg0: i32, %arg1: i32) -> (i32, i32, i32) {
    %c0_i32 = arith.constant 0 : i32
    %c0_i32_0 = arith.constant 0 : i32
    return %arg0, %c0_i32, %arg1 : i32, i32, i32
  }
  func.func @transform_1(%arg0: i32, %arg1: i32) -> (i32, i32, i32) {
    %c0_i32 = arith.constant 0 : i32
    %c0_i32_0 = arith.constant 0 : i32
    return %arg0, %c0_i32, %arg1 : i32, i32, i32
  }
  func.func @transform_2(%arg0: i32, %arg1: i32) -> (i32, i32) {
    %c0_i32 = arith.constant 0 : i32
    %c0_i32_0 = arith.constant 0 : i32
    %c0_i32_1 = arith.constant 0 : i32
    return %c0_i32, %c0_i32_0 : i32, i32
  }
  func.func @transform_3(%arg0: i32, %arg1: i32) -> (i32, i32) {
    %c1_i32 = arith.constant 1 : i32
    %0 = arith.muli %arg0, %c1_i32 : i32
    %1 = arith.addi %0, %arg1 : i32
    %c0_i32 = arith.constant 0 : i32
    %c0_i32_0 = arith.constant 0 : i32
    return %1, %c0_i32 : i32, i32
  }
}

</mosaic_0001>

<bundles_post_ra>
// kernel: tpu_custom_call.1
= control target key start
LH: loop header
LB: loop body
LE: loop exit
PB: predicated region body
PF: predicated region fallthrough
CT: control target
= control target key end

     0   :  { %8 = vsyncpa [#allocation3], 0  ;;  %s881_s0 = inlined_call_operand.hbm [shape: f32[2,4,256], index: 0, kind: input, shape index: {}]   ;;  %s882_s1 = inlined_call_operand.vmem [shape: s32[2,1,256], index: 1, kind: input, shape index: {}]   ;;  %s883_s2 = inlined_call_operand.vmem [shape: f32[4,1], index: 2, kind: input, shape index: {}]   ;;  %s884_s3 = inlined_call_operand.hbm [shape: f32[16,128], index: 3, kind: output, shape index: {}]  }
   0x1   :  { %10 = vsyncpa [#allocation3 + $0x1], 0 }
   0x2   :  { %11 = vsyncpa [#allocation4], 0 }
   0x3   :  { %13 = vsyncpa [#allocation4 + $0x1], 0  ;;  %s721_s12 = smov 0   ;;  %s723_s13 = smov 0  }
   0x4   :  { %s725_s14 = smov 0   ;;  %s727_s15 = smov 0  }
   0x5   :  { %s729_s16 = smov 0   ;;  %s731_s17 = smov 0  }
   0x6 LB: > { %s491_s18 = sadd.s32 4294967295, %s695_s17   ;;  %s492_s19 = sadd.s32 4294967294, %s695_s17   ;;  %s695_s17 = sphi %s731_s17, %s19_s17   ;;  %s691_s16 = sphi %s729_s16, %s896_s16   ;;  %s687_s15 = sphi %s727_s15, %s895_s15   ;;  %s683_s14 = sphi %s725_s14, %s894_s14   ;;  %s679_s13 = sphi %s723_s13, %s893_s13   ;;  %s675_s12 = sphi %s721_s12, %s892_s12  }
   0x7   : > { %s31_s20 = sadd.s32 1, %s691_s16  ;;  %s40_s21 = sadd.s32 1, %s683_s14 }
   0x8   : > { %p33_p0 = scmp.ge.s32.totalorder %s31_s20, 2  ;;  %p47_p1 = scmp.ne.s32.totalorder %s683_s14, %s679_s13 }
   0x9   : > { %p48_p2 = scmp.eq.s32.totalorder %s695_s17, 0  ;;  %p53_p3 = scmp.ne.s32.totalorder %s679_s13, %s675_s12 }
   0xa   : > { %s898_s20 = smov (%p33_p0, %s31_s20), 0  ;;  %p54_p5 = scmp.eq.s32.totalorder %s491_s18, 0 }
   0xb   : > { %p762_p4 = por %p48_p2, %p47_p1  ;;  %s35_s23 = ssub.s32 %s691_s16, %s898_s20 }
   0xc   : > { %p128_p6 = scmp.eq.s32.totalorder %s491_s18, 1  ;;  %p38_p7 = scmp.eq.s32.totalorder %s35_s23, 0 }
   0xd   : > { %p768_p8 = por %p54_p5, %p53_p3  ;;  %p134_p10 = scmp.eq.s32.totalorder %s492_s19, 1 }
   0xe   : > { %p772_p9 = por %p128_p6, %p47_p1  ;;  %p523_p13 = scmp.lt.s32.totalorder %s695_s17, 2 }
   0xf   : > { %s777_s26 = scalar_select %p38_p7, %s683_s14, %s40_s21  }
  0x10   : > { %p779_p11 = por %p134_p10, %p53_p3  ;;  %s157_s28 = sand.u32 1, %s683_s14  }
  0x11   : > { %s495_s29 = sshll.u32 %s157_s28, 3  ;;  %s508_s30 = sshll.u32 %s691_s16, 7 }
  0x12   : > { %s888_s27 = scalar_select %p779_p11, 1, 0 }
  0x13   : > { %s169_s6 = scalar_lea.hbm %s881_s0, %s508_s30  ;;  %s161_s7 = scalar_lea.vmem [#allocation2], %s495_s29 }
  0x14   : > { %s171_s8 = sshll.u32 %s161_s7, 4  ;;  %p792_p0 = pnand %p523_p13, %p762_p4  ;;  %s172_s8 = int_to_ptr.vmem [resolvable:$true] %s171_s8 }
  0x15   : > { %p498_p1 = scmp.ge.s32.totalorder %s695_s17, 1  ;;  %p188_p2 = scmp.lt.s32.totalorder %s695_s17, 3 }
  0x16   : > { %s158_s10 = scalar_lea.sflag [#allocation3], %s157_s28  ;;  %p589_p3 = pneg %p792_p0 }
  0x17   : > { %s600_s11 = scalar_lea.vmem %s172_s8, 128  ;;  %s697_s18 = smov [#allocation2]  }
  0x18   : > { %p601_p5 = scmp.ne.s32.totalorder %s172_s8, %s600_s11  ;;  %s605_s19 = sshll.u32 %s697_s18, 4  ;;  %s606_s19 = int_to_ptr.vmem [resolvable:$false] %s605_s19 }
  0x19   : > { %s607_s21 = scalar_lea.vmem %s606_s19, 256  ;;  %p608_p10 = scmp.lt.s32.totalorder %s172_s8, %s606_s19 }
  0x1a   : > { %p603_p6 = pnand %p601_p5, %p589_p3  ;;  %p609_p12 = scmp.lt.s32.totalorder %s607_s21, %s600_s11 }
  0x1c   : > { %p604_p7 = pneg %p603_p6  ;;  %p610_p4 = por %p609_p12, %p608_p10 }
  0x1e   : > { %p611_p13 = pnand %p610_p4, %p604_p7 }
  0x20   : > { %614 = shalt.err (!%p611_p13)
}
  0x21   : > { %518 = dma.hbm_to_vmem [thread:$0]  (!%p792_p0), %s169_s6, 128, %s172_s8, %s158_s10  }
  0x22   : > { %p189_p11 = pnand %p498_p1, %p188_p2 }
  0x23   : > { %s807_s22 = sand.u32 (!%p189_p11), 1, %s679_s13  }
  0x24   : > { %192 = sbr.rel (%p189_p11) target bundleno = 402 (0x192), region = 32  ;;  %s499_s23 = sshll.u32 (!%p189_p11), %s807_s22, 3 }
  0x25   : > { %s195_s28 = scalar_lea.sflag (!%p189_p11), [#allocation3], %s807_s22  ;;  %s198_s29 = scalar_lea.vmem (!%p189_p11), [#allocation2], %s499_s23 }
  0x29   : > { %666 = dma.done.wait (%p768_p8), %s195_s28, 128  }
  0x2a   : > { %668 = vsyncadd (%p768_p8), %s195_s28, 4294967168  ;;  %v698_v0 = vmov 0   ;;  %vm246_vm0 = vcmask 1043456   ;;  %v242_v1 = vld [vmem:[%s883_s2] sm:$0xf]  ;;  %p231_p8 = scmp.lt.s32.totalorder %s687_s15, 1  ;;  %v289_v21 = vlaneseq }
  0x2b   : > { %575 = vset.pattern.permute.xlu0 %v698_v0  ;;  %v240_v2 = vld [vmem:[%s198_s29] sm:$0xff]  ;;  %v699_v34 = vmov 0.0   ;;  %vm364_vm3 = vcmask 1040384   ;;  %s228_s9 = scalar_lea.vmem [#allocation5], %s499_s23  ;;  %s505_s11 = sshll.u32 %s687_s15, 7 }
  0x2c   : > { %331 = vperm.xlu0 %575, %v242_v1   ;;  %v244_v3 = vcombine.high %v240_v2, %v240_v2  ;;  %v247_v4 = vsel %vm246_vm0, %v240_v2, -inf  ;;  %s232_s24 = scalar_select %p231_p8, %s687_s15, 1  ;;  %v290_v22 = vshrl.u32 %v289_v21, 7 }
  0x2d   : > { %v248_v5 = vrot.slane %v247_v4, 4  ;;  %s394_s10 = sshll.u32 %s228_s9, 4  ;;  %s392_s28 = scalar_lea.hbm %s884_s3, %s505_s11  ;;  %s836_s10 = int_to_ptr.vmem [resolvable:$true] %s394_s10 }
  0x2e   : > { %v254_v6 = vsel %vm246_vm0, %v244_v3, -inf  ;;  %s501_s5 = sshll.u32 %s232_s24, 1  ;;  %v293_v24 = vsub.s32 0, %v290_v22  ;;  %v297_v25 = vsub.s32 1, %v290_v22  ;;  %s380_s29 = scalar_lea.sflag [#allocation4], %s807_s22 }
  0x2f   : > { %v249_v7 = vmax.f32 %v247_v4, %v248_v5  ;;  %v255_v8 = vrot.slane %v254_v6, 4  ;;  %s237_s8 = scalar_lea.vmem %s882_s1, %s501_s5  ;;  %s615_s30 = scalar_lea.vmem %s836_s10, 128 }
  0x30   : > { %v241_v26 = vld [vmem:[%s237_s8] sm:$0x3]  ;;  %p616_p11 = scmp.ne.s32.totalorder %s836_s10, %s615_s30  ;;  %s700_s23 = smov [#allocation5]  }
  0x31   : > { %v250_v9 = vrot.slane %v249_v7, 2  ;;  %v256_v10 = vmax.f32 %v254_v6, %v255_v8  ;;  %v294_v28 = vrot.slane %v241_v26, %v293_v24  ;;  %v298_v29 = vrot.slane %v241_v26, %v297_v25  ;;  %s619_s15 = sshll.u32 %s700_s23, 4  ;;  %s620_s15 = int_to_ptr.vmem [resolvable:$false] %s619_s15 }
  0x32   : > { %p617_p12 = pnand %p616_p11, %p772_p9  ;;  %s621_s4 = scalar_lea.vmem %s620_s15, 256 }
  0x33   : > { %v257_v11 = vrot.slane %v256_v10, 2  ;;  %v251_v12 = vmax.f32 %v249_v7, %v250_v9  ;;  %vm299_vm1 = vcmp.eq.s32.totalorder %v290_v22, %v294_v28  ;;  %vm300_vm2 = vcmp.eq.s32.totalorder %v290_v22, %v298_v29  ;;  %p622_p1 = scmp.lt.s32.totalorder %s836_s10, %s620_s15  ;;  %p623_p2 = scmp.lt.s32.totalorder %s621_s4, %s615_s30 }
  0x34   : > { %v502_v35 = vsel %vm299_vm1, 1.0, %v699_v34  ;;  %v503_v36 = vsel %vm300_vm2, 1.0, %v699_v34  ;;  %p618_p0 = pneg %p617_p12 }
  0x35   : > { %v258_v13 = vmax.f32 %v256_v10, %v257_v11  ;;  %v252_v14 = vrot.slane %v251_v12, 1  ;;  %v307_v39 = vcombine.low %v502_v35, %v503_v36  ;;  %p624_p3 = por %p623_p2, %p622_p1 }
  0x37   : > { %v259_v15 = vrot.slane %v258_v13, 1  ;;  %v253_v16 = vmax.f32 %v251_v12, %v252_v14  ;;  %p625_p5 = pnand %p624_p3, %p618_p0 }
  0x39   : > { %v260_v17 = vmax.f32 %v258_v13, %v259_v15 }
  0x3b   : > { %v263_v18 = vcombine.low %v253_v16, %v260_v17 }
  0x3d   : > { %v265_v19 = vsub.f32 %v240_v2, %v263_v18 }
  0x3f   : > { %v266_v20 = vmul.f32 1.442695, %v265_v19  ;;  %v309_v42 = vmul.f32 %v307_v39, %v265_v19 }
  0x41   : > { %577 = vpow2.f32 %v266_v20  ;;  %v311_v45 = vcombine.high %v309_v42, %v309_v42  ;;  %v313_v47 = vsel %vm246_vm0, %v309_v42, 0.0 }
  0x42   : > { %v314_v50 = vrot.slane %v313_v47, 4 }
  0x43   : > { %v320_v49 = vsel %vm246_vm0, %v311_v45, 0.0 }
  0x44   : > { %v321_v52 = vrot.slane %v320_v49, 4  ;;  %v315_v54 = vadd.f32 %v314_v50, %v313_v47 }
  0x46   : > { %v322_v55 = vadd.f32 %v321_v52, %v320_v49  ;;  %v316_v56 = vrot.slane %v315_v54, 2 }
  0x48   : > { %v323_v57 = vrot.slane %v322_v55, 2  ;;  %v317_v58 = vadd.f32 %v316_v56, %v315_v54 }
  0x4a   : > { %v324_v59 = vadd.f32 %v323_v57, %v322_v55  ;;  %v318_v60 = vrot.slane %v317_v58, 1 }
  0x4c   : > { %v325_v62 = vrot.slane %v324_v59, 1  ;;  %v319_v1 = vadd.f32 %v318_v60, %v317_v58 }
  0x4e   : > { %v578_v23 = vpop.eup %577  ;;  %v326_v3 = vadd.f32 %v325_v62, %v324_v59 }
  0x4f   : > { %v269_v27 = vcombine.high %v578_v23, %v578_v23  ;;  %v271_v30 = vsel %vm246_vm0, %v578_v23, 0.0 }
  0x50   : > { %v272_v32 = vrot.slane %v271_v30, 4 }
  0x51   : > { %v278_v31 = vsel %vm246_vm0, %v269_v27, 0.0 }
  0x52   : > { %v279_v33 = vrot.slane %v278_v31, 4  ;;  %v273_v37 = vadd.f32 %v272_v32, %v271_v30 }
  0x54   : > { %v280_v38 = vadd.f32 %v279_v33, %v278_v31  ;;  %v274_v40 = vrot.slane %v273_v37, 2 }
  0x56   : > { %v281_v41 = vrot.slane %v280_v38, 2  ;;  %v275_v43 = vadd.f32 %v274_v40, %v273_v37 }
  0x58   : > { %v282_v44 = vadd.f32 %v281_v41, %v280_v38  ;;  %v276_v46 = vrot.slane %v275_v43, 1 }
  0x5a   : > { %v283_v48 = vrot.slane %v282_v44, 1  ;;  %v277_v51 = vadd.f32 %v276_v46, %v275_v43 }
  0x5c   : > { %v284_v53 = vadd.f32 %v283_v48, %v282_v44  ;;  %579 = vlog2.f32 %v277_v51 }
  0x5e   : > { %581 = vlog2.f32 %v284_v53 }
  0x69   : > { %v580_v61 = vpop.eup %579 }
  0x6a   : > { %v286_v0 = vmul.f32 0.6931472, %v580_v61 }
  0x6b   : > { %v582_v63 = vpop.eup %581 }
  0x6c   : > { %v288_v2 = vmul.f32 0.6931472, %v582_v63  ;;  %v327_v4 = vsub.f32 %v319_v1, %v286_v0 }
  0x6e   : > { %v328_v5 = vsub.f32 %v326_v3, %v288_v2  ;;  %v350_v6 = vmul.f32 1.442695, %v327_v4 }
  0x70   : > { %v352_v7 = vmul.f32 1.442695, %v328_v5  ;;  %583 = vpow2.f32 %v350_v6 }
  0x72   : > { %585 = vpow2.f32 %v352_v7 }
  0x7d   : > { %v584_v8 = vpop.eup %583 }
  0x7e   : > { %v354_v11 = vsub.f32 1.0, %v584_v8 }
  0x7f   : > { %v586_v9 = vpop.eup %585 }
  0x80   : > { %v355_v12 = vsub.f32 1.0, %v586_v9  ;;  %v356_v19 = vmul.f32 %v354_v11, %v354_v11 }
  0x82   : > { %v357_v20 = vmul.f32 %v355_v12, %v355_v12  ;;  %v358_v25 = vsub.f32 0.0, %v356_v19 }
  0x84   : > { %v359_v26 = vsub.f32 0.0, %v357_v20  ;;  %v360_v31 = vmul.f32 %v358_v25, %v327_v4 }
  0x86   : > { %v361_v32 = vmul.f32 %v359_v26, %v328_v5 }
  0xa7   : > { %v332_v10 = vpop.permute.xlu0 %331 }
  0xa8   : > { %v334_v13 = vmul.f32 %v502_v35, %v332_v10  ;;  %v335_v14 = vmul.f32 %v503_v36, %v332_v10 }
  0xaa   : > { %v336_v15 = vsel %vm246_vm0, %v334_v13, 0.0  ;;  %v343_v16 = vsel %vm246_vm0, %v335_v14, 0.0 }
  0xab   : > { %v337_v17 = vrot.slane %v336_v15, 4  ;;  %v344_v18 = vrot.slane %v343_v16, 4 }
  0xad   : > { %v338_v21 = vadd.f32 %v337_v17, %v336_v15  ;;  %v345_v22 = vadd.f32 %v344_v18, %v343_v16 }
  0xaf   : > { %v339_v23 = vrot.slane %v338_v21, 2  ;;  %v346_v24 = vrot.slane %v345_v22, 2 }
  0xb1   : > { %v340_v27 = vadd.f32 %v339_v23, %v338_v21  ;;  %v347_v28 = vadd.f32 %v346_v24, %v345_v22 }
  0xb3   : > { %v341_v29 = vrot.slane %v340_v27, 1  ;;  %v348_v30 = vrot.slane %v347_v28, 1 }
  0xb5   : > { %v342_v33 = vadd.f32 %v341_v29, %v340_v27  ;;  %v349_v34 = vadd.f32 %v348_v30, %v347_v28 }
  0xb7   : > { %v362_v35 = vmul.f32 %v360_v31, %v342_v33  ;;  %v363_v36 = vmul.f32 %v361_v32, %v349_v34 }
  0xb9   : > { %v365_v37 = vsel %vm364_vm3, %v362_v35, 0.0  ;;  %v366_v38 = vsel %vm364_vm3, %v363_v36, 0.0 }
  0xba   : > { %v367_v39 = vadd.f32 %v366_v38, %v365_v37 }
  0xbc   : > { %368 = vadd.xlane.f32.xlu0 %v367_v39 }
 0x145   : > { %v369_v40 = vpop.xlane.xlu0 %368 }
 0x146   : > { %v370_v41 = vrot.slane %v369_v40, 4 }
 0x148   : > { %v371_v42 = vadd.f32 %v370_v41, %v369_v40 }
 0x14a   : > { %v372_v43 = vrot.slane %v371_v42, 2 }
 0x14c   : > { %v373_v44 = vadd.f32 %v372_v43, %v371_v42 }
 0x14e   : > { %v374_v45 = vrot.slane %v373_v44, 1 }
 0x150   : > { %v375_v46 = vadd.f32 %v374_v45, %v373_v44 }
 0x152   : > { %509 = vpush %v375_v46 }
 0x183   : > { %s510_s18 = spop %509 }
 0x184   : > { %v377_v47 = vstv %s510_s18 }
 0x185   : > { %378 = vst [vmem:[%s228_s9] sm:$0xff] %v377_v47 }
 0x186   : > { %628 = shalt.err (!%p625_p5)
}
 0x187   : > { %s629_s24 = scalar_lea.hbm %s392_s28, 128  ;;  %s633_s6 = scalar_lea.hbm %s884_s3, 256 }
 0x188   : > { %p630_p6 = scmp.ne.s32.totalorder %s392_s28, %s629_s24  ;;  %p634_p4 = scmp.lt.s32.totalorder %s392_s28, %s884_s3 }
 0x189   : > { %p635_p13 = scmp.lt.s32.totalorder %s633_s6, %s629_s24 }
 0x18a   : > { %p631_p7 = pnand %p630_p6, %p772_p9 }
 0x18b   : > { %p636_p8 = por %p635_p13, %p634_p4 }
 0x18c   : > { %p632_p10 = pneg %p631_p7 }
 0x18e   : > { %p637_p11 = pnand %p636_p8, %p632_p10 }
 0x190   : > { %640 = shalt.err (!%p637_p11)
}
 0x191   : > { %513 = dma.vmem_to_hbm [thread:$0]  (%p772_p9), %s836_s10, 128, %s392_s28, %s380_s29  }
 0x192 PF: > { %s406_s9 = sand.u32 1, %s675_s12   ;;  %p890_p12 = scmp.ne.s32.totalorder %s888_s27, 0 }
 0x193   : > { %p891_p0 = scmp.ge.s32.totalorder %s695_s17, 2  ;;  %s407_s11 = scalar_lea.sflag [#allocation4], %s406_s9 }
 0x195   : > { %p520_p1 = pnand %p891_p0, %p890_p12 }
 0x197   : > { %p521_p2 = pneg %p520_p1 }
 0x199   : > { %670 = dma.done.wait (%p521_p2), %s407_s11, 128  }
 0x19a   : > { %672 = vsyncadd (%p521_p2), %s407_s11, 4294967168  ;;  %s19_s17 = sadd.s32 1, %s695_s17   ;;  %s892_s12 = smov %s679_s13 }
 0x19b   : > { %p16_p3 = scmp.ge.s32.totalorder %s19_s17, 4   ;;  %s893_s13 = smov %s683_s14 }
 0x19c   : > { %s894_s14 = smov %s777_s26  ;;  %s895_s15 = smov %s691_s16 }
 0x19d   : > { %s896_s16 = smov %s898_s20  ;;  %18 = sbr.rel (!%p16_p3) target bundleno = 6 (0x6), region = 80 }
 0x1a2   :  { %412 = vsyncpa [#allocation3], 1 }
 0x1a3   :  { %414 = vsyncpa [#allocation3 + $0x1], 1 }
 0x1a4   :  { %415 = vsyncpa [#allocation4], 1 }
 0x1a5   :  { %417 = vsyncpa [#allocation4 + $0x1], 1 }

</bundles_post_ra>
